<compile_context>
chip_gen: v6e
topology: v6e:2x2x1
jax: 0.10.0
libtpu: 0.0.40
codegen_flags: <defaults>
</compile_context>

<pallas_src>
from functools import partial

import jax
import jax.numpy as jnp
from jax.experimental import pallas as pl
from jax.experimental.pallas import tpu as pltpu


def _choose_hw_tile(hw, max_tile=4096):
    """Largest HW tile <= max_tile that divides hw; prefers multiples of 128."""
    if hw <= max_tile:
        return hw
    for t in range(max_tile, 0, -128):
        if t > 0 and hw % t == 0:
            return t
    return hw  # fallback: untiled


# ----------------------------------------------------------------------------
# Kernel 1: template branch  (1x1 conv -> ReLU -> global average pool)
#   x: (1, C, HW) bf16,  w: (D, C) bf16,  b: (D, 1) f32  ->  out: (1, D, 1) f32
# ----------------------------------------------------------------------------
def _template_kernel(x_ref, w_ref, b_ref, out_ref, *, inv_hw):
    x = x_ref[0]                                                   # (C, HW) bf16
    feat = jnp.dot(w_ref[...], x, preferred_element_type=jnp.float32) + b_ref[...]
    feat = jnp.maximum(feat, 0.0)                                  # ReLU (D, HW)
    out_ref[...] = (jnp.sum(feat, axis=1, keepdims=True) * inv_hw)[None]   # GAP


def template_branch(params, img_nchw):
    B, C, H, W = img_nchw.shape
    hw = H * W
    x = img_nchw.reshape(B, C, hw).astype(jnp.bfloat16)            # free view, no transpose
    Wt = params["t_w"].astype(jnp.bfloat16)                        # (D, C)
    b = params["t_b"]                                              # (D, 1)
    D = Wt.shape[0]
    out = pl.pallas_call(
        partial(_template_kernel, inv_hw=1.0 / hw),
        out_shape=jax.ShapeDtypeStruct((B, D, 1), jnp.float32),
        grid=(B,),
        in_specs=[
            pl.BlockSpec((1, C, hw), lambda i: (i, 0, 0)),
            pl.BlockSpec((D, C), lambda i: (0, 0)),
            pl.BlockSpec((D, 1), lambda i: (0, 0)),
        ],
        out_specs=pl.BlockSpec((1, D, 1), lambda i: (i, 0, 0)),
        compiler_params=pltpu.CompilerParams(dimension_semantics=("parallel",)),
    )(x, Wt, b)
    return out.reshape(B, D)  # == [bs, D, 1, 1] embedding, squeezed


# ----------------------------------------------------------------------------
# Kernel 2: search branch
#   (1x1 conv -> ReLU) then merged score/box heads with the template-embedding
#   modulation folded into the (5, D) head weight. Per-batch sums of the head
#   output (score sum + box sums for the GAP box prediction / constraint loss)
#   are accumulated in a VMEM scratch across HW tiles.
# ----------------------------------------------------------------------------
def _search_kernel(x_ref, emb_ref, w1_ref, b1_ref, wh_ref, bh_ref, *rest,
                   with_score):
    if with_score:
        score_ref, sums_ref, acc_ref = rest
    else:
        sums_ref, acc_ref = rest

    t = pl.program_id(1)

    @pl.when(t == 0)
    def _():
        acc_ref[...] = jnp.zeros_like(acc_ref)

    x = x_ref[0]                                                   # (C, THW) bf16
    feat = jnp.dot(w1_ref[...], x, preferred_element_type=jnp.float32) + b1_ref[...]
    feat = jnp.maximum(feat, 0.0)                                  # (D, THW) f32

    # Fold per-batch embedding modulation into the tiny head weight:
    #   H @ (feat * emb) == (H * emb_row) @ feat
    emb_row = emb_ref[0]                                           # (1, D) f32
    scaled_h = wh_ref[...] * emb_row                               # (5, D)
    head = jnp.dot(scaled_h, feat, preferred_element_type=jnp.float32) + bh_ref[...]
    head = jax.nn.sigmoid(head)                                    # (5, THW)

    if with_score:
        score_ref[...] = head[0:1, :][None]                        # (1, 1, THW) lane-dense

    # row 0: score sum (constraint loss), rows 1:5: box sums (GAP box head)
    acc_ref[...] += jnp.sum(head, axis=1, keepdims=True)           # (5, 1)

    @pl.when(t == pl.num_programs(1) - 1)
    def _():
        sums_ref[...] = acc_ref[...][None]                         # (1, 5, 1)


def search_branch(params, img_nchw, template_embedding, *, with_score,
                  hw_tile=4096):
    B, C, H, W = img_nchw.shape
    hw = H * W
    thw = _choose_hw_tile(hw, hw_tile)
    n_t = hw // thw

    x = img_nchw.reshape(B, C, hw).astype(jnp.bfloat16)            # free view, no transpose
    emb = template_embedding.reshape(B, 1, -1).astype(jnp.float32)  # (B, 1, D)
    D = emb.shape[-1]
    w1 = params["s_w1"].astype(jnp.bfloat16)                       # (D, C)
    b1 = params["s_b1"]                                            # (D, 1)
    wh = params["s_wh"]                                            # (5, D) row0=score, rows1:5=box
    bh = params["s_bh"]                                            # (5, 1)

    if with_score:
        out_shape = (jax.ShapeDtypeStruct((B, 1, hw), jnp.float32),
                     jax.ShapeDtypeStruct((B, 5, 1), jnp.float32))
        out_specs = (pl.BlockSpec((1, 1, thw), lambda b, t: (b, 0, t)),
                     pl.BlockSpec((1, 5, 1), lambda b, t: (b, 0, 0)))
    else:
        out_shape = jax.ShapeDtypeStruct((B, 5, 1), jnp.float32)
        out_specs = pl.BlockSpec((1, 5, 1), lambda b, t: (b, 0, 0))

    outs = pl.pallas_call(
        partial(_search_kernel, with_score=with_score),
        out_shape=out_shape,
        grid=(B, n_t),
        in_specs=[
            pl.BlockSpec((1, C, thw), lambda b, t: (b, 0, t)),
            pl.BlockSpec((1, 1, D), lambda b, t: (b, 0, 0)),
            pl.BlockSpec((D, C), lambda b, t: (0, 0)),
            pl.BlockSpec((D, 1), lambda b, t: (0, 0)),
            pl.BlockSpec((5, D), lambda b, t: (0, 0)),
            pl.BlockSpec((5, 1), lambda b, t: (0, 0)),
        ],
        out_specs=out_specs,
        scratch_shapes=[pltpu.VMEM((5, 1), jnp.float32)],
        compiler_params=pltpu.CompilerParams(
            dimension_semantics=("parallel", "arbitrary"),
            vmem_limit_bytes=32 * 1024 * 1024,
        ),
    )(x, emb, w1, b1, wh, bh)

    if with_score:
        score, sums = outs
        score_map = score.reshape(B, 1, H, W)                      # NCHW score map
    else:
        score_map, sums = None, outs

    sums = sums[:, :, 0]                                           # (B, 5)
    score_sum = sums[:, 0]                                         # (B,) sum_hw score
    pred_boxes = sums[:, 1:5] / hw                                 # (B, 4) GAP box head
    batch_indices = jnp.arange(B, dtype=jnp.int32)
    return score_map, pred_boxes, batch_indices, score_sum


# ----------------------------------------------------------------------------
# Kernel 3: CLIP-style contrastive loss (matmul + bidirectional cross-entropy)
# ----------------------------------------------------------------------------
def _clip_loss_kernel(a_ref, b_ref, out_ref, *, inv_temp):
    a = a_ref[...]                                                 # (n, D)
    b = b_ref[...]                                                 # (n, D)
    n = a.shape[0]
    logits = jax.lax.dot_general(
        a, b, (((1,), (1,)), ((), ())), preferred_element_type=jnp.float32
    ) * inv_temp                                                   # (n, n)
    row = jax.lax.broadcasted_iota(jnp.int32, (n, n), 0)
    col = jax.lax.broadcasted_iota(jnp.int32, (n, n), 1)
    diag_mask = row == col
    diag_r = jnp.sum(jnp.where(diag_mask, logits, 0.0), axis=1, keepdims=True)  # (n,1)
    diag_c = jnp.sum(jnp.where(diag_mask, logits, 0.0), axis=0, keepdims=True)  # (1,n)
    m1 = jnp.max(logits, axis=1, keepdims=True)
    lse1 = m1 + jnp.log(jnp.sum(jnp.exp(logits - m1), axis=1, keepdims=True))
    loss_i = jnp.sum(lse1 - diag_r) / n
    m0 = jnp.max(logits, axis=0, keepdims=True)
    lse0 = m0 + jnp.log(jnp.sum(jnp.exp(logits - m0), axis=0, keepdims=True))
    loss_t = jnp.sum(lse0 - diag_c) / n
    out_ref[0, 0] = (loss_i + loss_t) * 0.5


def clip_contrastive_loss_pallas(emb_a, emb_b, temperature):
    a = emb_a.reshape(emb_a.shape[0], -1).astype(jnp.float32)
    b = emb_b.reshape(emb_b.shape[0], -1).astype(jnp.float32)
    kernel = partial(_clip_loss_kernel, inv_temp=float(1.0 / temperature))
    out = pl.pallas_call(
        kernel,
        out_shape=jax.ShapeDtypeStruct((1, 1), jnp.float32),
        in_specs=[pl.BlockSpec(memory_space=pltpu.MemorySpace.VMEM)] * 2,
        out_specs=pl.BlockSpec(memory_space=pltpu.MemorySpace.SMEM),
    )(a, b)
    return out[0, 0]


# ----------------------------------------------------------------------------
# UMatcher.forward == forward_cross
# ----------------------------------------------------------------------------
def umatcher_forward_cross(params, data, cfg, val=False):
    search_img = data["search_img"]
    ground_bbox = data["ground_bbox"]
    box_num = data["box_num"]

    search_img_shifted = jnp.roll(search_img, 1, axis=0)
    ground_bbox_shifted = jnp.roll(ground_bbox, 1, axis=0)
    box_num_shifted = jnp.roll(box_num, 1, axis=0)

    if cfg["dual_template"]:
        bs = data["template_img_a"].shape[0]
        # one fused pallas_call over both template batches (2*bs grid steps)
        both = jnp.concatenate([data["template_img_a"], data["template_img_b"]], axis=0)
        emb_all = template_branch(params, both)                    # (2*bs, D)
        emb_a, emb_b = emb_all[:bs], emb_all[bs:]
        template_embedding = emb_all                               # == cat([emb_a, emb_b])
    else:
        bs = data["template_img"].shape[0]
        emb_a = template_branch(params, data["template_img"])
        emb_b = None
        template_embedding = jnp.concatenate([emb_a, emb_a], axis=0)

    search_cat = jnp.concatenate([search_img, search_img_shifted], axis=0)
    ground_bbox_cat = jnp.concatenate([ground_bbox, ground_bbox_shifted], axis=0)
    box_num_cat = jnp.concatenate([box_num, box_num_shifted], axis=0)
    ground_absence = jnp.concatenate(
        [jnp.ones((bs,), jnp.float32), jnp.zeros((bs,), jnp.float32)], axis=0
    )

    # Training path: the score map never round-trips through HBM; the
    # constraint-loss reduction is fused into the search kernel as per-batch sums.
    score_map, pred_boxes, batch_indices, score_sum = search_branch(
        params, search_cat, template_embedding, with_score=val)
    if val:
        return (score_map, pred_boxes, batch_indices)

    del ground_bbox_cat, box_num_cat, pred_boxes, batch_indices, score_map

    # TODO(synk): compute_box_loss requires scipy.optimize.linear_sum_assignment
    # (Hungarian matching) + torchvision generalized_box_iou — no Pallas/TPU
    # equivalent for the assignment solver; iou / l1 losses left at 0.
    l1_loss = jnp.float32(0.0)
    giou_loss = jnp.float32(0.0)

    # TODO(synk): FocalLoss / generate_multi_heatmap are not defined in the
    # reference source; the score loss here is the fully specified
    # constraint_loss term only (|score - 0| * (1 - is_absence), summed / batch),
    # computed from the fused per-batch sums (scores are sigmoid outputs, >= 0).
    B_total = 2 * bs
    location_loss = jnp.sum(score_sum * (1.0 - ground_absence)) / B_total

    if cfg["dual_template"]:
        contrastive_loss = clip_contrastive_loss_pallas(emb_a, emb_b, cfg["temperature"])
    else:
        contrastive_loss = None

    lw = cfg["loss_weight"]
    total = lw["iou"] * giou_loss + lw["l1"] * l1_loss + lw["cls"] * location_loss
    if cfg["dual_template"]:
        total = total + lw["ctr"] * contrastive_loss

    return {
        "total_loss": total,
        "iou_loss": giou_loss,
        "l1_loss": l1_loss,
        "cls_loss": location_loss,
        "ctr_loss": contrastive_loss,
    }


# ----------------------------------------------------------------------------
# deterministic parameter init (synthetic branches)
# ----------------------------------------------------------------------------
def init_params(key, cin=3, d=32):
    ks = jax.random.split(key, 4)
    s = 0.1
    return {
        "t_w": s * jax.random.normal(ks[0], (d, cin), jnp.float32),   # (D, C)
        "t_b": jnp.zeros((d, 1), jnp.float32),
        "s_w1": s * jax.random.normal(ks[1], (d, cin), jnp.float32),  # (D, C)
        "s_b1": jnp.zeros((d, 1), jnp.float32),
        # merged heads: row 0 = score head, rows 1:5 = box head
        "s_wh": s * jax.random.normal(ks[2], (5, d), jnp.float32),
        "s_bh": jnp.zeros((5, 1), jnp.float32),
    }


if __name__ == "__main__":
    bs, search_size, template_size, emb_dim = 2, 16, 8, 32

    key = jax.random.PRNGKey(0)
    k0, k1, k2, k3 = jax.random.split(key, 4)
    data = {
        "template_img_a": jax.random.normal(k0, (bs, 3, template_size, template_size), jnp.float32),
        "template_img_b": jax.random.normal(k1, (bs, 3, template_size, template_size), jnp.float32),
        "search_img": jax.random.normal(k2, (bs, 3, search_size, search_size), jnp.float32),
        "ground_bbox": jax.random.uniform(k3, (bs, 4), jnp.float32),
        "box_num": jnp.ones((bs,), jnp.int32),
    }
    params = init_params(jax.random.PRNGKey(42), cin=3, d=emb_dim)
    cfg = {
        "dual_template": True,
        "temperature": 0.07,
        "search_size": search_size,
        "template_size": template_size,
        "loss_weight": {"cls": 1.0, "l1": 5.0, "iou": 2.0, "ctr": 0.5},
    }

    out = umatcher_forward_cross(params, data, cfg, val=False)
    jax.block_until_ready(out["total_loss"])
    print("KERNEL_OK")
</pallas_src>

<mosaic_0001>
module attributes {stable_mosaic.version = 11 : i64} {
  func.func @_template_kernel(%arg0: i32, %arg1: memref<1x3x64xbf16, #tpu.memory_space<vmem>>, %arg2: memref<32x3xbf16, #tpu.memory_space<vmem>>, %arg3: memref<32x1xf32, #tpu.memory_space<vmem>>, %arg4: memref<1x32x1xf32, #tpu.memory_space<vmem>>) attributes {dimension_semantics = [#tpu.dimension_semantics<parallel>], iteration_bounds = array<i64: 4>, scalar_prefetch = 0 : i64, scratch_operands = 0 : i64, tpu.core_type = #tpu.core_type<tc>, window_params = [{transform_indices = @transform_0, window_bounds = array<i64: 1, 3, 64>}, {pipeline_mode = #tpu.pipeline_mode<synchronous>, transform_indices = @transform_1, window_bounds = array<i64: 32, 3>}, {pipeline_mode = #tpu.pipeline_mode<synchronous>, transform_indices = @transform_2, window_bounds = array<i64: 32, 1>}, {transform_indices = @transform_3, window_bounds = array<i64: 1, 32, 1>}]} {
    %c0 = arith.constant 0 : index
    %c0_0 = arith.constant 0 : index
    %c0_1 = arith.constant 0 : index
    %0 = vector.load %arg1[%c0, %c0_0, %c0_1] : memref<1x3x64xbf16, #tpu.memory_space<vmem>>, vector<1x3x64xbf16>
    %1 = vector.shape_cast %0 : vector<1x3x64xbf16> to vector<3x64xbf16>
    %c0_2 = arith.constant 0 : index
    %c0_3 = arith.constant 0 : index
    %2 = vector.load %arg2[%c0_2, %c0_3] : memref<32x3xbf16, #tpu.memory_space<vmem>>, vector<32x3xbf16>
    %cst = arith.constant dense<0.000000e+00> : vector<32x64xf32>
    %3 = tpu.matmul %2, %1, %cst {dimension_numbers = #tpu.dot_dimension_numbers<[1], [0], [0], [1], [0, 0, 1, 1], [], []>} : vector<32x3xbf16>, vector<3x64xbf16>, vector<32x64xf32> -> vector<32x64xf32>
    %c0_4 = arith.constant 0 : index
    %c0_5 = arith.constant 0 : index
    %4 = vector.load %arg3[%c0_4, %c0_5] : memref<32x1xf32, #tpu.memory_space<vmem>>, vector<32x1xf32>
    %5 = vector.broadcast %4 : vector<32x1xf32> to vector<32x64xf32>
    %6 = arith.addf %3, %5 : vector<32x64xf32>
    %cst_6 = arith.constant 0.000000e+00 : f32
    %7 = vector.broadcast %cst_6 : f32 to vector<32x64xf32>
    %8 = arith.maximumf %6, %7 : vector<32x64xf32>
    %cst_7 = arith.constant dense<0.000000e+00> : vector<32xf32>
    %9 = vector.multi_reduction <add>, %8, %cst_7 [1] : vector<32x64xf32> to vector<32xf32>
    %10 = vector.shape_cast %9 : vector<32xf32> to vector<32x1xf32>
    %cst_8 = arith.constant 1.562500e-02 : f32
    %11 = vector.broadcast %cst_8 : f32 to vector<32x1xf32>
    %12 = arith.mulf %10, %11 : vector<32x1xf32>
    %13 = vector.shape_cast %12 : vector<32x1xf32> to vector<1x32x1xf32>
    %c0_9 = arith.constant 0 : index
    %c0_10 = arith.constant 0 : index
    %c0_11 = arith.constant 0 : index
    %14 = vector.load %arg4[%c0_9, %c0_10, %c0_11] : memref<1x32x1xf32, #tpu.memory_space<vmem>>, vector<1x32x1xf32>
    tpu.vector_store %arg4[%c0_9, %c0_10, %c0_11], %13 {strides = array<i32>} : memref<1x32x1xf32, #tpu.memory_space<vmem>>, vector<1x32x1xf32>,
    return
  }
  func.func @transform_0(%arg0: i32) -> (i32, i32, i32) {
    %c0_i32 = arith.constant 0 : i32
    %c0_i32_0 = arith.constant 0 : i32
    %c0_i32_1 = arith.constant 0 : i32
    return %arg0, %c0_i32, %c0_i32_0 : i32, i32, i32
  }
  func.func @transform_1(%arg0: i32) -> (i32, i32) {
    %c0_i32 = arith.constant 0 : i32
    %c0_i32_0 = arith.constant 0 : i32
    %c0_i32_1 = arith.constant 0 : i32
    return %c0_i32, %c0_i32_0 : i32, i32
  }
  func.func @transform_2(%arg0: i32) -> (i32, i32) {
    %c0_i32 = arith.constant 0 : i32
    %c0_i32_0 = arith.constant 0 : i32
    %c0_i32_1 = arith.constant 0 : i32
    return %c0_i32, %c0_i32_0 : i32, i32
  }
  func.func @transform_3(%arg0: i32) -> (i32, i32, i32) {
    %c0_i32 = arith.constant 0 : i32
    %c0_i32_0 = arith.constant 0 : i32
    %c0_i32_1 = arith.constant 0 : i32
    return %arg0, %c0_i32, %c0_i32_0 : i32, i32, i32
  }
}

</mosaic_0001>

<bundles_post_ra>
// kernel: tpu_custom_call.1
= control target key start
LH: loop header
LB: loop body
LE: loop exit
PB: predicated region body
PF: predicated region fallthrough
CT: control target
= control target key end

     0   :  { %s420_s12 = smov 0   ;;  %s461_s0 = inlined_call_operand.vmem [shape: bf16[4,3,64], index: 0, kind: input, shape index: {}]   ;;  %s462_s1 = inlined_call_operand.vmem [shape: bf16[32,3], index: 1, kind: input, shape index: {}]   ;;  %s463_s2 = inlined_call_operand.vmem [shape: f32[32,1], index: 2, kind: input, shape index: {}]   ;;  %s464_s3 = inlined_call_operand.vmem [shape: f32[4,32,1], index: 3, kind: output, shape index: {}]  }
   0x1 LB: > { %s352_s13 = sadd.s32 4294967295, %s396_s12   ;;  %p356_p0 = scmp.ge.s32.totalorder %s396_s12, 1  ;;  %s396_s12 = sphi %s420_s12, %s13_s12  }
   0x2   : > { %p136_p1 = scmp.lt.s32.totalorder %s396_s12, 5 }
   0x4   : > { %p137_p2 = pnand %p356_p0, %p136_p1 }
   0x5   : > { %p159_p3 = scmp.lt.s32.totalorder (!%p137_p2), %s352_s13, 3 }
   0x6   : > { %140 = sbr.rel (%p137_p2) target bundleno = 370 (0x172), region = 32 }
   0xb   : > { %vm215_vm0 = vcmask 1040384   ;;  %vm216_vm1 = vcmask 1041408   ;;  %v398_v0 = vmov 65535   ;;  %v388_v2 = vld [vmem:[%s462_s1] sm:$0xff]   ;;  %vm208_vm2 = vcmask 23552   ;;  %s466_s13 = smov (!%p159_p3, %s352_s13), 3 }
   0xc   : > { %v217_v1 = vsel %vm215_vm0, 4294967295, %v398_v0  ;;  %372 = vmatprep.mubr.msk.bf16.mxu0 %vm208_vm2, %v388_v2  ;;  %v174_v3 = vld [vmem:[%s463_s2] sm:$0xff]  ;;  %v176_v4 = vld [vmem:[%s463_s2 + $0x10] sm:$0xff]  ;;  %s357_s20 = sshll.u32 %s466_s13, 1  ;;  %v399_v6 = vmov 0   ;;  %v175_v8 = vld [vmem:[%s463_s2 + $0x8] sm:$0xff] }
   0xd   : > { %v218_v5 = vsel %vm216_vm1, %v217_v1, 0  ;;  %386 = vset.pattern.permute.xlu0 %v399_v6  ;;  %387 = vset.pattern.permute.xlu1 %v399_v6  ;;  %s162_s23 = scalar_lea.vmem %s461_s0, %s357_s20  ;;  %v177_v10 = vld [vmem:[%s463_s2 + $0x18] sm:$0xff]  ;;  %v389_v11 = vld [vmem:[%s462_s1 + $0x8] sm:$0xff]   ;;  %vm275_vm3 = vcmask 523264   ;;  %s366_s30 = sshll.u32 %s466_s13, 5  ;;  %vm292_vm4 = vcmask 7168  }
   0xe   : > { %180 = vperm.xlu0 %386, %v174_v3   ;;  %190 = vperm.xlu1 %387, %v176_v4   ;;  %v169_v7 = vld [vmem:[%s162_s23] sm:$0x3]  ;;  %s167_s6 = scalar_lea.vmem %s464_s3, %s366_s30 }
   0xf   : > { %v220_v9 = vand.u32 %v218_v5, %v169_v7 }
  0x11   : > { %370 = vmatprep.subr.bf16.mxu0 %v220_v9 }
  0x12   : > { %185 = vperm.xlu0 %386, %v175_v8   ;;  %371 = vmatpush3.bf16.msra.mxu0 %v220_v9 }
  0x13   : > { %195 = vperm.xlu1 %387, %v177_v10  }
  0x15   : > { %373 = vmatmul.mubr.msk.bf16.vlgmr.msra.gmra.mxu0 %vm208_vm2, %v389_v11 }
  0x89   : > { %v191_v12 = vpop.permute.xlu1 %190  ;;  %v181_v13 = vpop.permute.xlu0 %180 }
  0x8d   : > { %v186_v21 = vpop.permute.xlu0 %185 }
  0x8e   : > { %v196_v18 = vpop.permute.xlu1 %195 }
  0xd5   : > { %v374_v14 = vpop.f32.mrf.mxu0 }
  0xd6   : > { %v265_v16 = vadd.f32 %v374_v14, %v191_v12 }
  0xd7   : > { %v256_v15 = vpop.f32.mrf.mxu0 }
  0xd8   : > { %v257_v17 = vadd.f32 %v256_v15, %v181_v13  ;;  %v273_v23 = vmax.f32 %v265_v16, 0.0 }
  0xd9   : > { %v375_v19 = vpop.f32.mrf.mxu0 }
  0xda   : > { %v271_v20 = vmax.f32 %v257_v17, 0.0  ;;  %v268_v24 = vadd.f32 %v375_v19, %v196_v18  ;;  %v282_v30 = vsel %vm275_vm3, %v273_v23, 0.0 }
  0xdb   : > { %v259_v22 = vpop.f32.mrf.mxu0 }
  0xdc   : > { %v260_v25 = vadd.f32 %v259_v22, %v186_v21  ;;  %v276_v26 = vsel %vm275_vm3, %v271_v20, 0.0  ;;  %v274_v28 = vmax.f32 %v268_v24, 0.0 }
  0xdd   : > { %277 = vadd.xlane.f32.xlu0 %v276_v26 }
  0xde   : > { %v272_v27 = vmax.f32 %v260_v25, 0.0  ;;  %v285_v31 = vsel %vm275_vm3, %v274_v28, 0.0 }
  0xe0   : > { %v279_v29 = vsel %vm275_vm3, %v272_v27, 0.0 }
  0xe1   : > { %280 = vadd.xlane.f32.xlu1 %v279_v29  ;;  %283 = vadd.xlane.f32.xlu0 %v282_v30 }
  0xe5   : > { %286 = vadd.xlane.f32.xlu0 %v285_v31 }
 0x166   : > { %v278_v32 = vpop.xlane.xlu0 %277 }
 0x167   : > { %v288_v33 = vmul.f32 0.015625, %v278_v32 }
 0x169   : > { %293 = vst.msk [vmem:[%s167_s6] sm:$0xff] %vm292_vm4, %v288_v33 }
 0x16a   : > { %v281_v34 = vpop.xlane.xlu1 %280  ;;  %v284_v35 = vpop.xlane.xlu0 %283 }
 0x16b   : > { %v289_v36 = vmul.f32 0.015625, %v281_v34  ;;  %v290_v37 = vmul.f32 0.015625, %v284_v35 }
 0x16d   : > { %294 = vst.msk [vmem:[%s167_s6 + $0x8] sm:$0xff] %vm292_vm4, %v289_v36  ;;  %295 = vst.msk [vmem:[%s167_s6 + $0x10] sm:$0xff] %vm292_vm4, %v290_v37 }
 0x16e   : > { %v287_v38 = vpop.xlane.xlu0 %286 }
 0x16f   : > { %v291_v39 = vmul.f32 0.015625, %v287_v38 }
 0x171   : > { %296 = vst.msk [vmem:[%s167_s6 + $0x18] sm:$0xff] %vm292_vm4, %v291_v39 }
 0x172 PF: > { %s13_s12 = sadd.s32 1, %s396_s12  }
 0x173   : > { %p10_p4 = scmp.ge.s32.totalorder %s13_s12, 6  }
 0x175   :  { %12 = sbr.rel (!%p10_p4) target bundleno = 1 (0x1), region = 62 }

</bundles_post_ra>
